<compile_context>
chip_gen: v5e
topology: v5e:2x2
jax: 0.10.0
libtpu: 0.0.40
codegen_flags: <defaults>
</compile_context>

<pallas_src>
import functools

import jax
import jax.numpy as jnp
from jax.experimental import pallas as pl
from jax.experimental.pallas import tpu as pltpu

BN_EPS = 1e-5
LANE = 128
# Matmul input dtype.  float32 keeps the 1e-4 reference tolerance on every
# generation (and avoids extra VPU casts on v5e, which is store/bandwidth
# bound here).  Flip to jnp.bfloat16 on v6e/v7x for native-MXU throughput and
# halved input DMA bytes -- relax the test tolerance to ~3e-2 if you do.
MATMUL_DTYPE = jnp.float32
VMEM_LIMIT_BYTES = 32 * 1024 * 1024    # explicit scoped-VMEM budget
VMEM_TILE_BUDGET = 20 * 1024 * 1024    # headroom for double-buffered tiles


def _round_up(x, m):
    return (x + m - 1) // m * m


def _choose_tm(m, kd_pad, oc_pad):
    """Largest row tile that keeps >= 2 pipeline steps and fits the VMEM budget."""
    itemsize = jnp.dtype(MATMUL_DTYPE).itemsize
    for tm in (1024, 512, 256):
        # double-buffered patches + y tile + pass-2 in/out, plus resident weight
        work = 2 * tm * (kd_pad * itemsize + 3 * oc_pad * 4) + kd_pad * oc_pad * itemsize
        if work <= VMEM_TILE_BUDGET and m >= 2 * tm:
            return tm
    return 256


# --------------------------------------------------------------------------
# Pass 1: conv matmul + per-tile partial BN statistics (single pass, in-vreg)
# --------------------------------------------------------------------------
def _conv_stats_kernel(p_ref, w_ref, y_ref, sum_ref, sq_ref):
    # p_ref: (tm, Kd_pad), w_ref: (Kd_pad, OC_pad) -- full-width MXU contraction
    y = jnp.dot(p_ref[...], w_ref[...], preferred_element_type=jnp.float32)
    y_ref[...] = y                                            # raw conv output tile
    sum_ref[...] = jnp.sum(y, axis=0, keepdims=True)          # (1, OC_pad)
    sq_ref[...] = jnp.sum(y * y, axis=0, keepdims=True)       # (1, OC_pad)


# --------------------------------------------------------------------------
# Pass 2: fused per-channel affine + ReLU (lane-dense elementwise)
# --------------------------------------------------------------------------
def _bn_relu_kernel(y_ref, scale_ref, shift_ref, o_ref):
    o_ref[...] = jnp.maximum(y_ref[...] * scale_ref[...] + shift_ref[...], 0.0)


def _im2col(x, kh, kw, stride, padding):
    """x: (N, C, H, W) -> patches (N*OH*OW, C*KH*KW), OH, OW."""
    n, c, h, w = x.shape
    xp = jnp.pad(x, ((0, 0), (0, 0), (padding, padding), (padding, padding)))
    oh = (h + 2 * padding - kh) // stride + 1
    ow = (w + 2 * padding - kw) // stride + 1
    cols = []
    for i in range(kh):
        for j in range(kw):
            cols.append(xp[:, :, i:i + stride * oh:stride, j:j + stride * ow:stride])
    cols = jnp.stack(cols, axis=0).reshape(kh, kw, n, c, oh, ow)
    # -> (N, OH, OW, C, KH, KW): inner ordering C*KH*KW matches the PyTorch
    # weight layout (OC, C, KH, KW) flattened to (OC, C*KH*KW).
    cols = cols.transpose(2, 4, 5, 3, 0, 1)
    return cols.reshape(n * oh * ow, c * kh * kw), oh, ow


@functools.partial(jax.jit, static_argnames=("kernel_size", "stride", "padding"))
def conv2d_bn_relu(x, weight, gamma, beta, *, kernel_size, stride, padding):
    """Forward pass of models/cross_view.py::Conv2d with bn=True, relu=True.

    x:      (N, C_in, H, W)        float32 (NCHW, as in PyTorch)
    weight: (C_out, C_in, KH, KW)  float32 (no conv bias, since bn=True)
    gamma:  (C_out,)               BN weight
    beta:   (C_out,)               BN bias
    returns (N, C_out, OH, OW)     float32
    """
    n = x.shape[0]
    oc = weight.shape[0]
    kh = kw = kernel_size

    patches, oh, ow = _im2col(x, kh, kw, stride, padding)       # (M, Kd)
    m, kd = patches.shape

    kd_pad = _round_up(kd, LANE)
    oc_pad = _round_up(oc, LANE)
    tm = _choose_tm(m, kd_pad, oc_pad)
    m_pad = _round_up(m, tm)
    grid_m = m_pad // tm

    # Zero-pad for lane-dense layout.  Padded Kd columns / M rows contribute
    # nothing to the matmul or the BN sums; padded OC channels are sliced off
    # before returning (gamma padded with 0 -> padded channels stay 0).
    patches = jnp.pad(patches, ((0, m_pad - m), (0, kd_pad - kd))).astype(MATMUL_DTYPE)
    w_mat = jnp.pad(weight.reshape(oc, kd).T.astype(jnp.float32),
                    ((0, kd_pad - kd), (0, oc_pad - oc))).astype(MATMUL_DTYPE)
    g_pad = jnp.pad(gamma.astype(jnp.float32), (0, oc_pad - oc)).reshape(1, oc_pad)
    b_pad = jnp.pad(beta.astype(jnp.float32), (0, oc_pad - oc)).reshape(1, oc_pad)

    cparams = pltpu.CompilerParams(
        dimension_semantics=("parallel",),
        vmem_limit_bytes=VMEM_LIMIT_BYTES)

    # ---- Pass 1: tiled conv matmul + per-tile partial statistics ----
    y, psum, psq = pl.pallas_call(
        _conv_stats_kernel,
        out_shape=(
            jax.ShapeDtypeStruct((m_pad, oc_pad), jnp.float32),
            jax.ShapeDtypeStruct((grid_m, 1, oc_pad), jnp.float32),
            jax.ShapeDtypeStruct((grid_m, 1, oc_pad), jnp.float32),
        ),
        grid=(grid_m,),
        in_specs=[
            pl.BlockSpec((tm, kd_pad), lambda i: (i, 0)),
            pl.BlockSpec((kd_pad, oc_pad), lambda i: (0, 0)),   # resident weight
        ],
        out_specs=(
            pl.BlockSpec((tm, oc_pad), lambda i: (i, 0)),
            pl.BlockSpec((None, 1, oc_pad), lambda i: (i, 0, 0)),
            pl.BlockSpec((None, 1, oc_pad), lambda i: (i, 0, 0)),
        ),
        compiler_params=cparams,
    )(patches, w_mat)

    # ---- Tiny cross-tile reduction + BN coefficient math (OC-sized glue) ----
    # Training-mode BatchNorm2d: biased statistics over (N, H, W) == the true
    # M rows.  Padded (zero) rows added nothing to the sums, so divide by m.
    inv_m = 1.0 / m
    mean = jnp.sum(psum, axis=0) * inv_m                        # (1, oc_pad)
    ex2 = jnp.sum(psq, axis=0) * inv_m
    var = jnp.maximum(ex2 - mean * mean, 0.0)
    scale = g_pad * jax.lax.rsqrt(var + BN_EPS)                 # (1, oc_pad)
    shift = b_pad - mean * scale

    # ---- Pass 2: fused affine + ReLU over lane-dense tiles ----
    out_flat = pl.pallas_call(
        _bn_relu_kernel,
        out_shape=jax.ShapeDtypeStruct((m_pad, oc_pad), jnp.float32),
        grid=(grid_m,),
        in_specs=[
            pl.BlockSpec((tm, oc_pad), lambda i: (i, 0)),
            pl.BlockSpec((1, oc_pad), lambda i: (0, 0)),
            pl.BlockSpec((1, oc_pad), lambda i: (0, 0)),
        ],
        out_specs=pl.BlockSpec((tm, oc_pad), lambda i: (i, 0)),
        compiler_params=cparams,
    )(y, scale, shift)

    # Drop padded rows/channels, then (M, OC) -> (N, OH, OW, OC) -> NCHW.
    out = out_flat[:m, :oc].reshape(n, oh, ow, oc)
    return out.transpose(0, 3, 1, 2)


def _reference(x, weight, gamma, beta, *, stride, padding):
    """Pure-JAX reference: conv (NCHW/OIHW) + training-mode BN + ReLU."""
    y = jax.lax.conv_general_dilated(
        x, weight, window_strides=(stride, stride),
        padding=[(padding, padding), (padding, padding)],
        dimension_numbers=("NCHW", "OIHW", "NCHW"))
    mean = jnp.mean(y, axis=(0, 2, 3), keepdims=True)
    var = jnp.mean((y - mean) ** 2, axis=(0, 2, 3), keepdims=True)
    g = gamma.reshape(1, -1, 1, 1)
    b = beta.reshape(1, -1, 1, 1)
    y = (y - mean) * jax.lax.rsqrt(var + BN_EPS) * g + b
    return jnp.maximum(y, 0.0)


if __name__ == "__main__":
    # Small shapes consistent with the module: Conv2d(4, 8, 3, stride=1, padding=1)
    N, C_IN, C_OUT, H, W = 2, 4, 8, 16, 16
    K, STRIDE, PAD = 3, 1, 1

    key = jax.random.PRNGKey(0)
    kx, kw_, kg, kb = jax.random.split(key, 4)
    x = jax.random.normal(kx, (N, C_IN, H, W), dtype=jnp.float32)
    fan = C_IN * K * K
    weight = jax.random.normal(kw_, (C_OUT, C_IN, K, K), dtype=jnp.float32) * (fan ** -0.5)
    gamma = 1.0 + 0.1 * jax.random.normal(kg, (C_OUT,), dtype=jnp.float32)
    beta = 0.1 * jax.random.normal(kb, (C_OUT,), dtype=jnp.float32)

    out = conv2d_bn_relu(x, weight, gamma, beta,
                         kernel_size=K, stride=STRIDE, padding=PAD)
    out = jax.block_until_ready(out)

    ref = _reference(x, weight, gamma, beta, stride=STRIDE, padding=PAD)
    assert out.shape == (N, C_OUT, H, W), out.shape
    assert jnp.allclose(out, ref, atol=1e-4, rtol=1e-4), \
        float(jnp.max(jnp.abs(out - ref)))

    print("KERNEL_OK")
</pallas_src>

<mosaic_0001>
module attributes {stable_mosaic.version = 11 : i64} {
  func.func @_conv_stats_kernel(%arg0: i32, %arg1: memref<256x128xf32, #tpu.memory_space<vmem>>, %arg2: memref<128x128xf32, #tpu.memory_space<vmem>>, %arg3: memref<256x128xf32, #tpu.memory_space<vmem>>, %arg4: memref<1x1x128xf32, #tpu.memory_space<vmem>>, %arg5: memref<1x1x128xf32, #tpu.memory_space<vmem>>) attributes {dimension_semantics = [#tpu.dimension_semantics<parallel>], iteration_bounds = array<i64: 2>, scalar_prefetch = 0 : i64, scratch_operands = 0 : i64, tpu.core_type = #tpu.core_type<tc>, window_params = [{transform_indices = @transform_0, window_bounds = array<i64: 256, 128>}, {pipeline_mode = #tpu.pipeline_mode<synchronous>, transform_indices = @transform_1, window_bounds = array<i64: 128, 128>}, {transform_indices = @transform_2, window_bounds = array<i64: 256, 128>}, {transform_indices = @transform_3, window_bounds = array<i64: 1, 1, 128>}, {transform_indices = @transform_4, window_bounds = array<i64: 1, 1, 128>}]} {
    %c0 = arith.constant 0 : index
    %c0_0 = arith.constant 0 : index
    %0 = vector.load %arg1[%c0, %c0_0] : memref<256x128xf32, #tpu.memory_space<vmem>>, vector<256x128xf32>
    %c0_1 = arith.constant 0 : index
    %c0_2 = arith.constant 0 : index
    %1 = vector.load %arg2[%c0_1, %c0_2] : memref<128x128xf32, #tpu.memory_space<vmem>>, vector<128x128xf32>
    %cst = arith.constant dense<0.000000e+00> : vector<256x128xf32>
    %2 = tpu.matmul %0, %1, %cst {dimension_numbers = #tpu.dot_dimension_numbers<[1], [0], [0], [1], [0, 0, 1, 1], [], []>} : vector<256x128xf32>, vector<128x128xf32>, vector<256x128xf32> -> vector<256x128xf32>
    %c0_3 = arith.constant 0 : index
    %c0_4 = arith.constant 0 : index
    %3 = vector.load %arg3[%c0_3, %c0_4] : memref<256x128xf32, #tpu.memory_space<vmem>>, vector<256x128xf32>
    tpu.vector_store %arg3[%c0_3, %c0_4], %2 {strides = array<i32>} : memref<256x128xf32, #tpu.memory_space<vmem>>, vector<256x128xf32>,
    %cst_5 = arith.constant dense<0.000000e+00> : vector<128xf32>
    %4 = vector.multi_reduction <add>, %2, %cst_5 [0] : vector<256x128xf32> to vector<128xf32>
    %5 = vector.shape_cast %4 : vector<128xf32> to vector<1x128xf32>
    %c0_6 = arith.constant 0 : index
    %c0_7 = arith.constant 0 : index
    %c0_8 = arith.constant 0 : index
    %6 = vector.load %arg4[%c0_6, %c0_7, %c0_8] : memref<1x1x128xf32, #tpu.memory_space<vmem>>, vector<1x1x128xf32>
    %7 = vector.shape_cast %6 : vector<1x1x128xf32> to vector<1x128xf32>
    %8 = vector.shape_cast %5 : vector<1x128xf32> to vector<1x1x128xf32>
    tpu.vector_store %arg4[%c0_6, %c0_7, %c0_8], %8 {strides = array<i32>} : memref<1x1x128xf32, #tpu.memory_space<vmem>>, vector<1x1x128xf32>,
    %9 = arith.mulf %2, %2 : vector<256x128xf32>
    %cst_9 = arith.constant dense<0.000000e+00> : vector<128xf32>
    %10 = vector.multi_reduction <add>, %9, %cst_9 [0] : vector<256x128xf32> to vector<128xf32>
    %11 = vector.shape_cast %10 : vector<128xf32> to vector<1x128xf32>
    %c0_10 = arith.constant 0 : index
    %c0_11 = arith.constant 0 : index
    %c0_12 = arith.constant 0 : index
    %12 = vector.load %arg5[%c0_10, %c0_11, %c0_12] : memref<1x1x128xf32, #tpu.memory_space<vmem>>, vector<1x1x128xf32>
    %13 = vector.shape_cast %12 : vector<1x1x128xf32> to vector<1x128xf32>
    %14 = vector.shape_cast %11 : vector<1x128xf32> to vector<1x1x128xf32>
    tpu.vector_store %arg5[%c0_10, %c0_11, %c0_12], %14 {strides = array<i32>} : memref<1x1x128xf32, #tpu.memory_space<vmem>>, vector<1x1x128xf32>,
    return
  }
  func.func @transform_0(%arg0: i32) -> (i32, i32) {
    %c0_i32 = arith.constant 0 : i32
    %c0_i32_0 = arith.constant 0 : i32
    return %arg0, %c0_i32 : i32, i32
  }
  func.func @transform_1(%arg0: i32) -> (i32, i32) {
    %c0_i32 = arith.constant 0 : i32
    %c0_i32_0 = arith.constant 0 : i32
    %c0_i32_1 = arith.constant 0 : i32
    return %c0_i32, %c0_i32_0 : i32, i32
  }
  func.func @transform_2(%arg0: i32) -> (i32, i32) {
    %c0_i32 = arith.constant 0 : i32
    %c0_i32_0 = arith.constant 0 : i32
    return %arg0, %c0_i32 : i32, i32
  }
  func.func @transform_3(%arg0: i32) -> (i32, i32, i32) {
    %c0_i32 = arith.constant 0 : i32
    %c0_i32_0 = arith.constant 0 : i32
    %c0_i32_1 = arith.constant 0 : i32
    return %arg0, %c0_i32, %c0_i32_0 : i32, i32, i32
  }
  func.func @transform_4(%arg0: i32) -> (i32, i32, i32) {
    %c0_i32 = arith.constant 0 : i32
    %c0_i32_0 = arith.constant 0 : i32
    %c0_i32_1 = arith.constant 0 : i32
    return %arg0, %c0_i32, %c0_i32_0 : i32, i32, i32
  }
}

module attributes {stable_mosaic.version = 11 : i64} {
  func.func @_bn_relu_kernel(%arg0: i32, %arg1: memref<256x128xf32, #tpu.memory_space<vmem>>, %arg2: memref<1x128xf32, #tpu.memory_space<vmem>>, %arg3: memref<1x128xf32, #tpu.memory_space<vmem>>, %arg4: memref<256x128xf32, #tpu.memory_space<vmem>>) attributes {dimension_semantics = [#tpu.dimension_semantics<parallel>], iteration_bounds = array<i64: 2>, scalar_prefetch = 0 : i64, scratch_operands = 0 : i64, tpu.core_type = #tpu.core_type<tc>, window_params = [{transform_indices = @transform_0, window_bounds = array<i64: 256, 128>}, {pipeline_mode = #tpu.pipeline_mode<synchronous>, transform_indices = @transform_1, window_bounds = array<i64: 1, 128>}, {pipeline_mode = #tpu.pipeline_mode<synchronous>, transform_indices = @transform_2, window_bounds = array<i64: 1, 128>}, {transform_indices = @transform_3, window_bounds = array<i64: 256, 128>}]} {
    %c0 = arith.constant 0 : index
    %c0_0 = arith.constant 0 : index
    %0 = vector.load %arg1[%c0, %c0_0] : memref<256x128xf32, #tpu.memory_space<vmem>>, vector<256x128xf32>
    %c0_1 = arith.constant 0 : index
    %c0_2 = arith.constant 0 : index
    %1 = vector.load %arg2[%c0_1, %c0_2] : memref<1x128xf32, #tpu.memory_space<vmem>>, vector<1x128xf32>
    %2 = vector.broadcast %1 : vector<1x128xf32> to vector<256x128xf32>
    %3 = arith.mulf %0, %2 : vector<256x128xf32>
    %c0_3 = arith.constant 0 : index
    %c0_4 = arith.constant 0 : index
    %4 = vector.load %arg3[%c0_3, %c0_4] : memref<1x128xf32, #tpu.memory_space<vmem>>, vector<1x128xf32>
    %5 = vector.broadcast %4 : vector<1x128xf32> to vector<256x128xf32>
    %6 = arith.addf %3, %5 : vector<256x128xf32>
    %cst = arith.constant 0.000000e+00 : f32
    %7 = vector.broadcast %cst : f32 to vector<256x128xf32>
    %8 = arith.maximumf %6, %7 : vector<256x128xf32>
    %c0_5 = arith.constant 0 : index
    %c0_6 = arith.constant 0 : index
    %9 = vector.load %arg4[%c0_5, %c0_6] : memref<256x128xf32, #tpu.memory_space<vmem>>, vector<256x128xf32>
    tpu.vector_store %arg4[%c0_5, %c0_6], %8 {strides = array<i32>} : memref<256x128xf32, #tpu.memory_space<vmem>>, vector<256x128xf32>,
    return
  }
  func.func @transform_0(%arg0: i32) -> (i32, i32) {
    %c0_i32 = arith.constant 0 : i32
    %c0_i32_0 = arith.constant 0 : i32
    return %arg0, %c0_i32 : i32, i32
  }
  func.func @transform_1(%arg0: i32) -> (i32, i32) {
    %c0_i32 = arith.constant 0 : i32
    %c0_i32_0 = arith.constant 0 : i32
    %c0_i32_1 = arith.constant 0 : i32
    return %c0_i32, %c0_i32_0 : i32, i32
  }
  func.func @transform_2(%arg0: i32) -> (i32, i32) {
    %c0_i32 = arith.constant 0 : i32
    %c0_i32_0 = arith.constant 0 : i32
    %c0_i32_1 = arith.constant 0 : i32
    return %c0_i32, %c0_i32_0 : i32, i32
  }
  func.func @transform_3(%arg0: i32) -> (i32, i32) {
    %c0_i32 = arith.constant 0 : i32
    %c0_i32_0 = arith.constant 0 : i32
    return %arg0, %c0_i32 : i32, i32
  }
}

</mosaic_0001>

<bundles_post_ra>
// kernel: conv2d_bn_relu.3
= control target key start
LH: loop header
LB: loop body
LE: loop exit
PB: predicated region body
PF: predicated region fallthrough
CT: control target
= control target key end

     0   :  { %s447_s12 = smov 0   ;;  %s606_s0 = inlined_call_operand.vmem [shape: f32[512,128], index: 0, kind: input, shape index: {}]   ;;  %s607_s1 = inlined_call_operand.vmem [shape: f32[1,128], index: 1, kind: input, shape index: {}]   ;;  %s608_s2 = inlined_call_operand.vmem [shape: f32[1,128], index: 2, kind: input, shape index: {}]   ;;  %s609_s3 = inlined_call_operand.vmem [shape: f32[512,128], index: 3, kind: output, shape index: {}]  }
   0x1 LB: > { %s398_s13 = sadd.s32 4294967295, %s425_s12   ;;  %p402_p0 = scmp.ge.s32.totalorder %s425_s12, 1  ;;  %s425_s12 = sphi %s447_s12, %s13_s12  }
   0x2   : > { %p138_p1 = scmp.lt.s32.totalorder %s425_s12, 3 }
   0x4   : > { %p139_p2 = pnand %p402_p0, %p138_p1 }
   0x5   : > { %s403_s14 = sshll.u32 (!%p139_p2), %s398_s13, 5 }
   0x6   : > { %142 = sbr.rel (%p139_p2) target bundleno = 53 (0x35), region = 32  ;;  %p163_p3 = scmp.lt.s32.totalorder (!%p139_p2), %s403_s14, 63 }
   0xb   : > { %s611_s14 = smov (!%p163_p3, %s403_s14), 63  ;;  %v458_v0 = vld [vmem:[%s607_s1] ss:$0 sm:$0xff] }
   0xc   : > { %s404_s17 = sshll.u32 %s611_s14, 3  ;;  %v468_v1 = vld [vmem:[%s608_s2] ss:$0 sm:$0xff] }
   0xd   : > { %s463_s20 = scalar_lea.vmem %s606_s0, %s404_s17  ;;  %s491_s25 = scalar_lea.vmem %s609_s3, %s404_s17 }
   0xe   : > { %v174_v2 = vld [vmem:[%s463_s20] sm:$0xff]  ;;  %v175_v3 = vld [vmem:[%s463_s20 + $0x8] sm:$0xff]  ;;  %v176_v4 = vld [vmem:[%s463_s20 + $0x10] sm:$0xff] }
   0xf   : > { %v210_v5 = vmul.f32 %v458_v0, %v174_v2  ;;  %v211_v6 = vmul.f32 %v458_v0, %v175_v3  ;;  %v212_v7 = vmul.f32 %v458_v0, %v176_v4  ;;  %v177_v8 = vld [vmem:[%s463_s20 + $0x18] sm:$0xff]  ;;  %v178_v9 = vld [vmem:[%s463_s20 + $0x20] sm:$0xff]  ;;  %v179_v10 = vld [vmem:[%s463_s20 + $0x28] sm:$0xff] }
  0x10   : > { %v213_v11 = vmul.f32 %v458_v0, %v177_v8  ;;  %v214_v12 = vmul.f32 %v458_v0, %v178_v9  ;;  %v215_v13 = vmul.f32 %v458_v0, %v179_v10  ;;  %v180_v14 = vld [vmem:[%s463_s20 + $0x30] sm:$0xff]  ;;  %v181_v15 = vld [vmem:[%s463_s20 + $0x38] sm:$0xff]  ;;  %v182_v24 = vld [vmem:[%s463_s20 + $0x40] sm:$0xff] }
  0x11   : > { %v246_v16 = vadd.f32 %v468_v1, %v210_v5  ;;  %v247_v17 = vadd.f32 %v468_v1, %v211_v6  ;;  %v248_v18 = vadd.f32 %v468_v1, %v212_v7  ;;  %v216_v19 = vmul.f32 %v458_v0, %v180_v14  ;;  %v183_v25 = vld [vmem:[%s463_s20 + $0x48] sm:$0xff]  ;;  %v184_v26 = vld [vmem:[%s463_s20 + $0x50] sm:$0xff]  ;;  %v185_v31 = vld [vmem:[%s463_s20 + $0x58] sm:$0xff] }
  0x12   : > { %v249_v20 = vadd.f32 %v468_v1, %v213_v11  ;;  %v250_v21 = vadd.f32 %v468_v1, %v214_v12  ;;  %v251_v22 = vadd.f32 %v468_v1, %v215_v13  ;;  %v217_v23 = vmul.f32 %v458_v0, %v181_v15  ;;  %v186_v32 = vld [vmem:[%s463_s20 + $0x60] sm:$0xff]  ;;  %v187_v33 = vld [vmem:[%s463_s20 + $0x68] sm:$0xff]  ;;  %v188_v37 = vld [vmem:[%s463_s20 + $0x70] sm:$0xff] }
  0x13   : > { %v278_v27 = vmax.f32 %v246_v16, 0.0  ;;  %v279_v28 = vmax.f32 %v247_v17, 0.0  ;;  %v280_v29 = vmax.f32 %v248_v18, 0.0  ;;  %v252_v30 = vadd.f32 %v468_v1, %v216_v19  ;;  %v189_v42 = vld [vmem:[%s463_s20 + $0x78] sm:$0xff]  ;;  %v190_v54 = vld [vmem:[%s463_s20 + $0x80] sm:$0xff]  ;;  %v191_v55 = vld [vmem:[%s463_s20 + $0x88] sm:$0xff] }
  0x14   : > { %v281_v34 = vmax.f32 %v249_v20, 0.0  ;;  %v282_v35 = vmax.f32 %v250_v21, 0.0  ;;  %v253_v36 = vadd.f32 %v468_v1, %v217_v23  ;;  %v283_v38 = vmax.f32 %v251_v22, 0.0  ;;  %v192_v56 = vld [vmem:[%s463_s20 + $0x90] sm:$0xff]  ;;  %v193_v59 = vld [vmem:[%s463_s20 + $0x98] sm:$0xff]  ;;  %v194_v63 = vld [vmem:[%s463_s20 + $0xa0] sm:$0xff] }
  0x15   : > { %310 = vst [vmem:[%s491_s25] sm:$0xff] %v278_v27  ;;  %v218_v39 = vmul.f32 %v458_v0, %v182_v24  ;;  %v219_v40 = vmul.f32 %v458_v0, %v183_v25  ;;  %v220_v41 = vmul.f32 %v458_v0, %v184_v26  ;;  %v284_v43 = vmax.f32 %v252_v30, 0.0  ;;  %v195_v6 = vld [vmem:[%s463_s20 + $0xa8] sm:$0xff]  ;;  %v196_v10 = vld [vmem:[%s463_s20 + $0xb0] sm:$0xff]  ;;  %v197_v14 = vld [vmem:[%s463_s20 + $0xb8] sm:$0xff] }
  0x16   : > { %311 = vst [vmem:[%s491_s25 + $0x8] sm:$0xff] %v279_v28  ;;  %v221_v44 = vmul.f32 %v458_v0, %v185_v31  ;;  %v222_v45 = vmul.f32 %v458_v0, %v186_v32  ;;  %v223_v46 = vmul.f32 %v458_v0, %v187_v33  ;;  %v224_v50 = vmul.f32 %v458_v0, %v188_v37  ;;  %v198_v18 = vld [vmem:[%s463_s20 + $0xc0] sm:$0xff]  ;;  %v199_v22 = vld [vmem:[%s463_s20 + $0xc8] sm:$0xff]  ;;  %v200_v26 = vld [vmem:[%s463_s20 + $0xd0] sm:$0xff] }
  0x17   : > { %312 = vst [vmem:[%s491_s25 + $0x10] sm:$0xff] %v280_v29  ;;  %v254_v47 = vadd.f32 %v468_v1, %v218_v39  ;;  %v255_v48 = vadd.f32 %v468_v1, %v219_v40  ;;  %v256_v49 = vadd.f32 %v468_v1, %v220_v41  ;;  %v285_v51 = vmax.f32 %v253_v36, 0.0  ;;  %v201_v30 = vld [vmem:[%s463_s20 + $0xd8] sm:$0xff] }
  0x18   : > { %313 = vst [vmem:[%s491_s25 + $0x18] sm:$0xff] %v281_v34  ;;  %v257_v52 = vadd.f32 %v468_v1, %v221_v44  ;;  %v225_v53 = vmul.f32 %v458_v0, %v189_v42  ;;  %v258_v58 = vadd.f32 %v468_v1, %v222_v45  ;;  %v259_v62 = vadd.f32 %v468_v1, %v223_v46  ;;  %v202_v34 = vld [vmem:[%s463_s20 + $0xe0] sm:$0xff]  ;;  %v204_v42 = vld [vmem:[%s463_s20 + $0xf0] sm:$0xff]  ;;  %v205_v46 = vld [vmem:[%s463_s20 + $0xf8] sm:$0xff] }
  0x19   : > { %314 = vst [vmem:[%s491_s25 + $0x20] sm:$0xff] %v282_v35  ;;  %v286_v57 = vmax.f32 %v254_v47, 0.0  ;;  %v287_v60 = vmax.f32 %v255_v48, 0.0  ;;  %v288_v61 = vmax.f32 %v256_v49, 0.0  ;;  %v260_v2 = vadd.f32 %v468_v1, %v224_v50 }
  0x1a   : > { %315 = vst [vmem:[%s491_s25 + $0x28] sm:$0xff] %v283_v38  ;;  %v226_v3 = vmul.f32 %v458_v0, %v190_v54  ;;  %v227_v4 = vmul.f32 %v458_v0, %v191_v55  ;;  %v228_v5 = vmul.f32 %v458_v0, %v192_v56  ;;  %v289_v7 = vmax.f32 %v257_v52, 0.0  ;;  %v203_v38 = vld [vmem:[%s463_s20 + $0xe8] sm:$0xff] }
  0x1b   : > { %316 = vst [vmem:[%s491_s25 + $0x30] sm:$0xff] %v284_v43  ;;  %v261_v8 = vadd.f32 %v468_v1, %v225_v53  ;;  %v229_v9 = vmul.f32 %v458_v0, %v193_v59  ;;  %v290_v11 = vmax.f32 %v258_v58, 0.0  ;;  %v230_v13 = vmul.f32 %v458_v0, %v194_v63 }
  0x1c   : > { %317 = vst [vmem:[%s491_s25 + $0x38] sm:$0xff] %v285_v51  ;;  %v262_v12 = vadd.f32 %v468_v1, %v226_v3  ;;  %v291_v15 = vmax.f32 %v259_v62, 0.0  ;;  %v263_v16 = vadd.f32 %v468_v1, %v227_v4  ;;  %v231_v17 = vmul.f32 %v458_v0, %v195_v6 }
  0x1d   : > { %318 = vst [vmem:[%s491_s25 + $0x40] sm:$0xff] %v286_v57  ;;  %v292_v19 = vmax.f32 %v260_v2, 0.0  ;;  %v264_v20 = vadd.f32 %v468_v1, %v228_v5  ;;  %v232_v21 = vmul.f32 %v458_v0, %v196_v10  ;;  %v293_v23 = vmax.f32 %v261_v8, 0.0 }
  0x1e   : > { %319 = vst [vmem:[%s491_s25 + $0x48] sm:$0xff] %v287_v60  ;;  %v265_v24 = vadd.f32 %v468_v1, %v229_v9  ;;  %v233_v25 = vmul.f32 %v458_v0, %v197_v14  ;;  %v294_v27 = vmax.f32 %v262_v12, 0.0  ;;  %v266_v28 = vadd.f32 %v468_v1, %v230_v13 }
  0x1f   : > { %320 = vst [vmem:[%s491_s25 + $0x50] sm:$0xff] %v288_v61  ;;  %v234_v29 = vmul.f32 %v458_v0, %v198_v18  ;;  %v295_v31 = vmax.f32 %v263_v16, 0.0  ;;  %v267_v32 = vadd.f32 %v468_v1, %v231_v17  ;;  %v235_v33 = vmul.f32 %v458_v0, %v199_v22 }
  0x20   : > { %321 = vst [vmem:[%s491_s25 + $0x58] sm:$0xff] %v289_v7  ;;  %v296_v35 = vmax.f32 %v264_v20, 0.0  ;;  %v268_v36 = vadd.f32 %v468_v1, %v232_v21  ;;  %v236_v37 = vmul.f32 %v458_v0, %v200_v26  ;;  %v297_v39 = vmax.f32 %v265_v24, 0.0 }
  0x21   : > { %322 = vst [vmem:[%s491_s25 + $0x60] sm:$0xff] %v290_v11  ;;  %v269_v40 = vadd.f32 %v468_v1, %v233_v25  ;;  %v237_v41 = vmul.f32 %v458_v0, %v201_v30  ;;  %v298_v43 = vmax.f32 %v266_v28, 0.0  ;;  %v270_v44 = vadd.f32 %v468_v1, %v234_v29 }
  0x22   : > { %323 = vst [vmem:[%s491_s25 + $0x68] sm:$0xff] %v291_v15  ;;  %v238_v45 = vmul.f32 %v458_v0, %v202_v34  ;;  %v299_v47 = vmax.f32 %v267_v32, 0.0  ;;  %v271_v48 = vadd.f32 %v468_v1, %v235_v33  ;;  %v239_v49 = vmul.f32 %v458_v0, %v203_v38 }
  0x23   : > { %324 = vst [vmem:[%s491_s25 + $0x70] sm:$0xff] %v292_v19  ;;  %v300_v50 = vmax.f32 %v268_v36, 0.0  ;;  %v272_v51 = vadd.f32 %v468_v1, %v236_v37  ;;  %v240_v52 = vmul.f32 %v458_v0, %v204_v42  ;;  %v301_v53 = vmax.f32 %v269_v40, 0.0 }
  0x24   : > { %325 = vst [vmem:[%s491_s25 + $0x78] sm:$0xff] %v293_v23  ;;  %v273_v54 = vadd.f32 %v468_v1, %v237_v41  ;;  %v241_v55 = vmul.f32 %v458_v0, %v205_v46  ;;  %v302_v56 = vmax.f32 %v270_v44, 0.0  ;;  %v274_v57 = vadd.f32 %v468_v1, %v238_v45 }
  0x25   : > { %326 = vst [vmem:[%s491_s25 + $0x80] sm:$0xff] %v294_v27  ;;  %v303_v58 = vmax.f32 %v271_v48, 0.0  ;;  %v275_v59 = vadd.f32 %v468_v1, %v239_v49  ;;  %v304_v60 = vmax.f32 %v272_v51, 0.0  ;;  %v276_v61 = vadd.f32 %v468_v1, %v240_v52 }
  0x26   : > { %327 = vst [vmem:[%s491_s25 + $0x88] sm:$0xff] %v295_v31  ;;  %v305_v0 = vmax.f32 %v273_v54, 0.0  ;;  %v277_v62 = vadd.f32 %v468_v1, %v241_v55  ;;  %v306_v63 = vmax.f32 %v274_v57, 0.0 }
  0x27   : > { %328 = vst [vmem:[%s491_s25 + $0x90] sm:$0xff] %v296_v35  ;;  %v307_v2 = vmax.f32 %v275_v59, 0.0  ;;  %v308_v3 = vmax.f32 %v276_v61, 0.0 }
  0x28   : > { %329 = vst [vmem:[%s491_s25 + $0x98] sm:$0xff] %v297_v39  ;;  %v309_v4 = vmax.f32 %v277_v62, 0.0 }
  0x29   : > { %330 = vst [vmem:[%s491_s25 + $0xa0] sm:$0xff] %v298_v43 }
  0x2a   : > { %331 = vst [vmem:[%s491_s25 + $0xa8] sm:$0xff] %v299_v47 }
  0x2b   : > { %332 = vst [vmem:[%s491_s25 + $0xb0] sm:$0xff] %v300_v50 }
  0x2c   : > { %333 = vst [vmem:[%s491_s25 + $0xb8] sm:$0xff] %v301_v53 }
  0x2d   : > { %334 = vst [vmem:[%s491_s25 + $0xc0] sm:$0xff] %v302_v56 }
  0x2e   : > { %335 = vst [vmem:[%s491_s25 + $0xc8] sm:$0xff] %v303_v58 }
  0x2f   : > { %336 = vst [vmem:[%s491_s25 + $0xd0] sm:$0xff] %v304_v60 }
  0x30   : > { %337 = vst [vmem:[%s491_s25 + $0xd8] sm:$0xff] %v305_v0 }
  0x31   : > { %338 = vst [vmem:[%s491_s25 + $0xe0] sm:$0xff] %v306_v63 }
  0x32   : > { %339 = vst [vmem:[%s491_s25 + $0xe8] sm:$0xff] %v307_v2 }
  0x33   : > { %340 = vst [vmem:[%s491_s25 + $0xf0] sm:$0xff] %v308_v3 }
  0x34   : > { %341 = vst [vmem:[%s491_s25 + $0xf8] sm:$0xff] %v309_v4 }
  0x35 PF: > { %s13_s12 = sadd.s32 1, %s425_s12  }
  0x36   : > { %p10_p4 = scmp.ge.s32.totalorder %s13_s12, 4  }
  0x38   :  { %12 = sbr.rel (!%p10_p4) target bundleno = 1 (0x1), region = 62 }

// kernel: conv2d_bn_relu.2
= control target key start
LH: loop header
LB: loop body
LE: loop exit
PB: predicated region body
PF: predicated region fallthrough
CT: control target
= control target key end

     0   :  { %s725_s15 = smov 0   ;;  %s984_s0 = inlined_call_operand.vmem [shape: f32[512,128], index: 0, kind: input, shape index: {}]   ;;  %s985_s1 = inlined_call_operand.vmem [shape: f32[128,128], index: 1, kind: input, shape index: {}]   ;;  %s986_s2 = inlined_call_operand.vmem [shape: f32[512,128], index: 2, kind: output, shape index: {0}]   ;;  %s987_s3 = inlined_call_operand.vmem [shape: f32[2,1,128], index: 3, kind: output, shape index: {1}]   ;;  %s988_s4 = inlined_call_operand.vmem [shape: f32[2,1,128], index: 4, kind: output, shape index: {2}]  }
   0x1 LB: > { %s731_s16 = sadd.s32 4294967295, %s698_s15   ;;  %p629_p0 = scmp.ge.s32.totalorder %s698_s15, 1  ;;  %s698_s15 = sphi %s725_s15, %s15_s15  }
   0x2   : > { %p168_p1 = scmp.lt.s32.totalorder %s698_s15, 3 }
   0x4   : > { %p169_p2 = pnand %p629_p0, %p168_p1 }
   0x5   : > { %s630_s7 = sshll.u32 (!%p169_p2), %s731_s16, 5  ;;  %p212_p4 = scmp.lt.s32.totalorder (!%p169_p2), %s731_s16, 1 }
   0x6   : > { %172 = sbr.rel (%p169_p2) target bundleno = 290 (0x122), region = 28  ;;  %p201_p3 = scmp.lt.s32.totalorder (!%p169_p2), %s630_s7, 63 }
   0xb   : > { %v265_v0 = vld [vmem:[%s985_s1 + $0x78] sm:$0xff]  ;;  %v264_v1 = vld [vmem:[%s985_s1 + $0x70] sm:$0xff]  ;;  %v263_v2 = vld [vmem:[%s985_s1 + $0x68] sm:$0xff]  ;;  %s990_s7 = smov (!%p201_p3, %s630_s7), 63  ;;  %s992_s16 = smov (!%p212_p4, %s731_s16), 1 }
   0xc   : > { %266 = vmatpush.msra.mxu0 %v265_v0  ;;  %636 = vmatpush.msra.mxu1 %v265_v0  ;;  %v262_v3 = vld [vmem:[%s985_s1 + $0x60] sm:$0xff]  ;;  %v261_v4 = vld [vmem:[%s985_s1 + $0x58] sm:$0xff]  ;;  %v260_v5 = vld [vmem:[%s985_s1 + $0x50] sm:$0xff]  ;;  %s631_s20 = sshll.u32 %s990_s7, 3  ;;  %s214_s9 = scalar_lea.vmem %s987_s3, %s992_s16 }
   0xd   : > { %637 = vmatpush.msra.mxu2 %v265_v0  ;;  %638 = vmatpush.msra.mxu3 %v265_v0  ;;  %v259_v6 = vld [vmem:[%s985_s1 + $0x48] sm:$0xff]  ;;  %v258_v7 = vld [vmem:[%s985_s1 + $0x40] sm:$0xff]  ;;  %v257_v8 = vld [vmem:[%s985_s1 + $0x38] sm:$0xff]  ;;  %s789_s27 = scalar_lea.vmem %s984_s0, %s631_s20  ;;  %s831_s6 = scalar_lea.vmem %s986_s2, %s631_s20 }
   0xe   : > { %267 = vmatpush.msra.mxu0 %v264_v1  ;;  %639 = vmatpush.msra.mxu1 %v264_v1  ;;  %v256_v9 = vld [vmem:[%s985_s1 + $0x30] sm:$0xff]  ;;  %v255_v10 = vld [vmem:[%s985_s1 + $0x28] sm:$0xff]  ;;  %v254_v11 = vld [vmem:[%s985_s1 + $0x20] sm:$0xff]  ;;  %s217_s12 = scalar_lea.vmem %s988_s4, %s992_s16 }
   0xf   : > { %640 = vmatpush.msra.mxu2 %v264_v1  ;;  %641 = vmatpush.msra.mxu3 %v264_v1  ;;  %v253_v12 = vld [vmem:[%s985_s1 + $0x18] sm:$0xff]  ;;  %v252_v13 = vld [vmem:[%s985_s1 + $0x10] sm:$0xff]  ;;  %v251_v14 = vld [vmem:[%s985_s1 + $0x8] sm:$0xff] }
  0x10   : > { %268 = vmatpush.msra.mxu0 %v263_v2  ;;  %642 = vmatpush.msra.mxu1 %v263_v2  ;;  %v250_v15 = vld [vmem:[%s985_s1] sm:$0xff]  ;;  %v219_v19 = vld [vmem:[%s789_s27 + $0x8] sm:$0xff]  ;;  %v220_v23 = vld [vmem:[%s789_s27 + $0x10] sm:$0xff] }
  0x11   : > { %643 = vmatpush.msra.mxu2 %v263_v2  ;;  %644 = vmatpush.msra.mxu3 %v263_v2  ;;  %v218_v16 = vld [vmem:[%s789_s27] sm:$0xff]  ;;  %v227_v20 = vld [vmem:[%s789_s27 + $0x48] sm:$0xff]  ;;  %v228_v24 = vld [vmem:[%s789_s27 + $0x50] sm:$0xff] }
  0x12   : > { %269 = vmatpush.msra.mxu0 %v262_v3  ;;  %645 = vmatpush.msra.mxu1 %v262_v3  ;;  %v226_v17 = vld [vmem:[%s789_s27 + $0x40] sm:$0xff]  ;;  %v235_v21 = vld [vmem:[%s789_s27 + $0x88] sm:$0xff]  ;;  %v236_v25 = vld [vmem:[%s789_s27 + $0x90] sm:$0xff] }
  0x13   : > { %646 = vmatpush.msra.mxu2 %v262_v3  ;;  %647 = vmatpush.msra.mxu3 %v262_v3  ;;  %v234_v18 = vld [vmem:[%s789_s27 + $0x80] sm:$0xff]  ;;  %v243_v26 = vld [vmem:[%s789_s27 + $0xc8] sm:$0xff]  ;;  %v221_v27 = vld [vmem:[%s789_s27 + $0x18] sm:$0xff] }
  0x14   : > { %270 = vmatpush.msra.mxu0 %v261_v4  ;;  %648 = vmatpush.msra.mxu1 %v261_v4  ;;  %v242_v22 = vld [vmem:[%s789_s27 + $0xc0] sm:$0xff]  ;;  %v229_v28 = vld [vmem:[%s789_s27 + $0x58] sm:$0xff]  ;;  %v244_v30 = vld [vmem:[%s789_s27 + $0xd0] sm:$0xff] }
  0x15   : > { %649 = vmatpush.msra.mxu2 %v261_v4  ;;  %650 = vmatpush.msra.mxu3 %v261_v4  ;;  %v237_v29 = vld [vmem:[%s789_s27 + $0x98] sm:$0xff]  ;;  %v222_v31 = vld [vmem:[%s789_s27 + $0x20] sm:$0xff]  ;;  %v223_v35 = vld [vmem:[%s789_s27 + $0x28] sm:$0xff] }
  0x16   : > { %271 = vmatpush.msra.mxu0 %v260_v5  ;;  %651 = vmatpush.msra.mxu1 %v260_v5  ;;  %v230_v32 = vld [vmem:[%s789_s27 + $0x60] sm:$0xff]  ;;  %v245_v33 = vld [vmem:[%s789_s27 + $0xd8] sm:$0xff]  ;;  %v231_v36 = vld [vmem:[%s789_s27 + $0x68] sm:$0xff] }
  0x17   : > { %652 = vmatpush.msra.mxu2 %v260_v5  ;;  %653 = vmatpush.msra.mxu3 %v260_v5  ;;  %v238_v34 = vld [vmem:[%s789_s27 + $0xa0] sm:$0xff]  ;;  %v239_v38 = vld [vmem:[%s789_s27 + $0xa8] sm:$0xff]  ;;  %v224_v39 = vld [vmem:[%s789_s27 + $0x30] sm:$0xff] }
  0x18   : > { %272 = vmatpush.msra.mxu0 %v259_v6  ;;  %654 = vmatpush.msra.mxu1 %v259_v6  ;;  %v246_v37 = vld [vmem:[%s789_s27 + $0xe0] sm:$0xff]  ;;  %v232_v40 = vld [vmem:[%s789_s27 + $0x70] sm:$0xff]  ;;  %v247_v41 = vld [vmem:[%s789_s27 + $0xe8] sm:$0xff] }
  0x19   : > { %655 = vmatpush.msra.mxu2 %v259_v6  ;;  %656 = vmatpush.msra.mxu3 %v259_v6  ;;  %v240_v42 = vld [vmem:[%s789_s27 + $0xb0] sm:$0xff]  ;;  %v225_v43 = vld [vmem:[%s789_s27 + $0x38] sm:$0xff] }
  0x1a   : > { %273 = vmatpush.msra.mxu0 %v258_v7  ;;  %657 = vmatpush.msra.mxu1 %v258_v7  ;;  %v233_v44 = vld [vmem:[%s789_s27 + $0x78] sm:$0xff]  ;;  %v248_v45 = vld [vmem:[%s789_s27 + $0xf0] sm:$0xff] }
  0x1b   : > { %658 = vmatpush.msra.mxu2 %v258_v7  ;;  %659 = vmatpush.msra.mxu3 %v258_v7  ;;  %v241_v46 = vld [vmem:[%s789_s27 + $0xb8] sm:$0xff] }
  0x1c   : > { %274 = vmatpush.msra.mxu0 %v257_v8  ;;  %660 = vmatpush.msra.mxu1 %v257_v8  ;;  %v249_v47 = vld [vmem:[%s789_s27 + $0xf8] sm:$0xff] }
  0x1d   : > { %661 = vmatpush.msra.mxu2 %v257_v8  ;;  %662 = vmatpush.msra.mxu3 %v257_v8 }
  0x1e   : > { %275 = vmatpush.msra.mxu0 %v256_v9  ;;  %663 = vmatpush.msra.mxu1 %v256_v9 }
  0x1f   : > { %664 = vmatpush.msra.mxu2 %v256_v9  ;;  %665 = vmatpush.msra.mxu3 %v256_v9 }
  0x20   : > { %276 = vmatpush.msra.mxu0 %v255_v10  ;;  %666 = vmatpush.msra.mxu1 %v255_v10 }
  0x21   : > { %667 = vmatpush.msra.mxu2 %v255_v10  ;;  %668 = vmatpush.msra.mxu3 %v255_v10 }
  0x22   : > { %277 = vmatpush.msra.mxu0 %v254_v11  ;;  %669 = vmatpush.msra.mxu1 %v254_v11 }
  0x23   : > { %670 = vmatpush.msra.mxu2 %v254_v11  ;;  %671 = vmatpush.msra.mxu3 %v254_v11 }
  0x24   : > { %278 = vmatpush.msra.mxu0 %v253_v12  ;;  %672 = vmatpush.msra.mxu1 %v253_v12 }
  0x25   : > { %673 = vmatpush.msra.mxu2 %v253_v12  ;;  %674 = vmatpush.msra.mxu3 %v253_v12 }
  0x26   : > { %279 = vmatpush.msra.mxu0 %v252_v13  ;;  %675 = vmatpush.msra.mxu1 %v252_v13 }
  0x27   : > { %676 = vmatpush.msra.mxu2 %v252_v13  ;;  %677 = vmatpush.msra.mxu3 %v252_v13 }
  0x28   : > { %280 = vmatpush.msra.mxu0 %v251_v14  ;;  %678 = vmatpush.msra.mxu1 %v251_v14 }
  0x29   : > { %679 = vmatpush.msra.mxu2 %v251_v14  ;;  %680 = vmatpush.msra.mxu3 %v251_v14 }
  0x2a   : > { %281 = vmatpush.msra.mxu0 %v250_v15  ;;  %681 = vmatpush.msra.mxu1 %v250_v15 }
  0x2b   : > { %282 = vmatmul.f32.vlgmr.msra.gmra.mxu0 %v218_v16  ;;  %306 = vmatmul.f32.vlgmr.msra.gmra.mxu1 %v226_v17 }
  0x2c   : > { %682 = vmatpush.msra.mxu2 %v250_v15  ;;  %683 = vmatpush.msra.mxu3 %v250_v15 }
  0x2d   : > { %330 = vmatmul.f32.vlgmr.msra.gmra.mxu2 %v234_v18  ;;  %354 = vmatmul.f32.vlgmr.msra.gmra.mxu3 %v242_v22 }
  0x33   : > { %285 = vmatmul.f32.gmra.mxu0 %v219_v19  ;;  %309 = vmatmul.f32.gmra.mxu1 %v227_v20 }
  0x35   : > { %333 = vmatmul.f32.gmra.mxu2 %v235_v21  ;;  %357 = vmatmul.f32.gmra.mxu3 %v243_v26 }
  0x3b   : > { %288 = vmatmul.f32.gmra.mxu0 %v220_v23  ;;  %312 = vmatmul.f32.gmra.mxu1 %v228_v24 }
  0x3d   : > { %336 = vmatmul.f32.gmra.mxu2 %v236_v25  ;;  %360 = vmatmul.f32.gmra.mxu3 %v244_v30 }
  0x43   : > { %291 = vmatmul.f32.gmra.mxu0 %v221_v27  ;;  %315 = vmatmul.f32.gmra.mxu1 %v229_v28 }
  0x45   : > { %339 = vmatmul.f32.gmra.mxu2 %v237_v29  ;;  %363 = vmatmul.f32.gmra.mxu3 %v245_v33 }
  0x4b   : > { %294 = vmatmul.f32.gmra.mxu0 %v222_v31  ;;  %318 = vmatmul.f32.gmra.mxu1 %v230_v32 }
  0x4d   : > { %342 = vmatmul.f32.gmra.mxu2 %v238_v34  ;;  %366 = vmatmul.f32.gmra.mxu3 %v246_v37 }
  0x53   : > { %297 = vmatmul.f32.gmra.mxu0 %v223_v35  ;;  %321 = vmatmul.f32.gmra.mxu1 %v231_v36 }
  0x55   : > { %345 = vmatmul.f32.gmra.mxu2 %v239_v38  ;;  %369 = vmatmul.f32.gmra.mxu3 %v247_v41 }
  0x5b   : > { %300 = vmatmul.f32.gmra.mxu0 %v224_v39  ;;  %324 = vmatmul.f32.gmra.mxu1 %v232_v40 }
  0x5d   : > { %348 = vmatmul.f32.gmra.mxu2 %v240_v42  ;;  %372 = vmatmul.f32.gmra.mxu3 %v248_v45 }
  0x63   : > { %303 = vmatmul.f32.gmra.mxu0 %v225_v43  ;;  %327 = vmatmul.f32.gmra.mxu1 %v233_v44 }
  0x65   : > { %351 = vmatmul.f32.gmra.mxu2 %v241_v46  ;;  %375 = vmatmul.f32.gmra.mxu3 %v249_v47 }
  0xa8   : > { %v283_v48 = vpop.f32.mrf.mxu0  ;;  %v833_v49 = vpop.f32.mrf.mxu1 }
  0xa9   : > { %379 = vst [vmem:[%s831_s6] sm:$0xff] %v283_v48  ;;  %v449_v6 = vmul.f32 %v283_v48, %v283_v48  ;;  %v457_v34 = vmul.f32 %v833_v49, %v833_v49 }
  0xaa   : > { %387 = vst [vmem:[%s831_s6 + $0x40] sm:$0xff] %v833_v49 }
  0xb0   : > { %v286_v50 = vpop.f32.mrf.mxu0  ;;  %v838_v51 = vpop.f32.mrf.mxu1 }
  0xb1   : > { %380 = vst [vmem:[%s831_s6 + $0x8] sm:$0xff] %v286_v50  ;;  %v841_v52 = vpop.f32.mrf.mxu2  ;;  %v852_v56 = vpop.f32.mrf.mxu3  ;;  %v450_v5 = vmul.f32 %v286_v50, %v286_v50  ;;  %v411_v7 = vadd.f32 %v286_v50, %v283_v48  ;;  %v458_v37 = vmul.f32 %v838_v51, %v838_v51 }
  0xb2   : > { %388 = vst [vmem:[%s831_s6 + $0x48] sm:$0xff] %v838_v51 }
  0xb3   : > { %395 = vst [vmem:[%s831_s6 + $0x80] sm:$0xff] %v841_v52  ;;  %v481_v9 = vadd.f32 %v450_v5, %v449_v6 }
  0xb4   : > { %403 = vst [vmem:[%s831_s6 + $0xc0] sm:$0xff] %v852_v56 }
  0xb8   : > { %v289_v53 = vpop.f32.mrf.mxu0  ;;  %v847_v54 = vpop.f32.mrf.mxu1 }
  0xb9   : > { %381 = vst [vmem:[%s831_s6 + $0x10] sm:$0xff] %v289_v53  ;;  %v850_v55 = vpop.f32.mrf.mxu2  ;;  %v865_v60 = vpop.f32.mrf.mxu3  ;;  %v451_v8 = vmul.f32 %v289_v53, %v289_v53  ;;  %v412_v10 = vadd.f32 %v411_v7, %v289_v53  ;;  %v459_v40 = vmul.f32 %v847_v54, %v847_v54 }
  0xba   : > { %389 = vst [vmem:[%s831_s6 + $0x50] sm:$0xff] %v847_v54 }
  0xbb   : > { %396 = vst [vmem:[%s831_s6 + $0x88] sm:$0xff] %v850_v55  ;;  %v482_v14 = vadd.f32 %v481_v9, %v451_v8  ;;  %v465_v8 = vmul.f32 %v841_v52, %v841_v52 }
  0xbc   : > { %404 = vst [vmem:[%s831_s6 + $0xc8] sm:$0xff] %v865_v60 }
  0xc0   : > { %v292_v57 = vpop.f32.mrf.mxu0  ;;  %v860_v58 = vpop.f32.mrf.mxu1 }
  0xc1   : > { %382 = vst [vmem:[%s831_s6 + $0x18] sm:$0xff] %v292_v57  ;;  %v863_v59 = vpop.f32.mrf.mxu2  ;;  %v878_v0 = vpop.f32.mrf.mxu3  ;;  %v452_v11 = vmul.f32 %v292_v57, %v292_v57  ;;  %v413_v15 = vadd.f32 %v412_v10, %v292_v57  ;;  %v460_v43 = vmul.f32 %v860_v58, %v860_v58  ;;  %v466_v10 = vmul.f32 %v850_v55, %v850_v55 }
  0xc2   : > { %390 = vst [vmem:[%s831_s6 + $0x58] sm:$0xff] %v860_v58 }
  0xc3   : > { %397 = vst [vmem:[%s831_s6 + $0x90] sm:$0xff] %v863_v59  ;;  %v483_v19 = vadd.f32 %v482_v14, %v452_v11 }
  0xc4   : > { %405 = vst [vmem:[%s831_s6 + $0xd0] sm:$0xff] %v878_v0 }
  0xc8   : > { %v295_v61 = vpop.f32.mrf.mxu0  ;;  %v873_v62 = vpop.f32.mrf.mxu1 }
  0xc9   : > { %383 = vst [vmem:[%s831_s6 + $0x20] sm:$0xff] %v295_v61  ;;  %v876_v63 = vpop.f32.mrf.mxu2  ;;  %v891_v4 = vpop.f32.mrf.mxu3  ;;  %v453_v16 = vmul.f32 %v295_v61, %v295_v61  ;;  %v414_v20 = vadd.f32 %v413_v15, %v295_v61  ;;  %v461_v48 = vmul.f32 %v873_v62, %v873_v62 }
  0xca   : > { %391 = vst [vmem:[%s831_s6 + $0x60] sm:$0xff] %v873_v62  ;;  %v468_v15 = vmul.f32 %v876_v63, %v876_v63 }
  0xcb   : > { %398 = vst [vmem:[%s831_s6 + $0x98] sm:$0xff] %v876_v63  ;;  %v484_v22 = vadd.f32 %v483_v19, %v453_v16 }
  0xcc   : > { %406 = vst [vmem:[%s831_s6 + $0xd8] sm:$0xff] %v891_v4 }
  0xd0   : > { %v298_v1 = vpop.f32.mrf.mxu0  ;;  %v886_v2 = vpop.f32.mrf.mxu1 }
  0xd1   : > { %384 = vst [vmem:[%s831_s6 + $0x28] sm:$0xff] %v298_v1  ;;  %v889_v3 = vpop.f32.mrf.mxu2  ;;  %v902_v18 = vpop.f32.mrf.mxu3  ;;  %v454_v21 = vmul.f32 %v298_v1, %v298_v1  ;;  %v415_v23 = vadd.f32 %v414_v20, %v298_v1  ;;  %v462_v53 = vmul.f32 %v886_v2, %v886_v2 }
  0xd2   : > { %392 = vst [vmem:[%s831_s6 + $0x68] sm:$0xff] %v886_v2 }
  0xd3   : > { %399 = vst [vmem:[%s831_s6 + $0xa0] sm:$0xff] %v889_v3  ;;  %v485_v25 = vadd.f32 %v484_v22, %v454_v21 }
  0xd4   : > { %407 = vst [vmem:[%s831_s6 + $0xe0] sm:$0xff] %v902_v18 }
  0xd8   : > { %v301_v12 = vpop.f32.mrf.mxu0  ;;  %v325_v13 = vpop.f32.mrf.mxu1 }
  0xd9   : > { %385 = vst [vmem:[%s831_s6 + $0x30] sm:$0xff] %v301_v12  ;;  %v900_v17 = vpop.f32.mrf.mxu2  ;;  %v455_v24 = vmul.f32 %v301_v12, %v301_v12  ;;  %v416_v26 = vadd.f32 %v415_v23, %v301_v12  ;;  %v910_v33 = vpop.f32.mrf.mxu3  ;;  %v467_v12 = vmul.f32 %v863_v59, %v863_v59 }
  0xda   : > { %393 = vst [vmem:[%s831_s6 + $0x70] sm:$0xff] %v325_v13  ;;  %v470_v22 = vmul.f32 %v900_v17, %v900_v17 }
  0xdb   : > { %400 = vst [vmem:[%s831_s6 + $0xa8] sm:$0xff] %v900_v17  ;;  %v486_v29 = vadd.f32 %v485_v25, %v455_v24 }
  0xdc   : > { %408 = vst [vmem:[%s831_s6 + $0xe8] sm:$0xff] %v910_v33 }
  0xe0   : > { %v304_v27 = vpop.f32.mrf.mxu0  ;;  %v328_v28 = vpop.f32.mrf.mxu1 }
  0xe1   : > { %386 = vst [vmem:[%s831_s6 + $0x38] sm:$0xff] %v304_v27  ;;  %v417_v30 = vadd.f32 %v416_v26, %v304_v27  ;;  %v456_v31 = vmul.f32 %v304_v27, %v304_v27  ;;  %v349_v32 = vpop.f32.mrf.mxu2  ;;  %v373_v47 = vpop.f32.mrf.mxu3  ;;  %v464_v1 = vmul.f32 %v328_v28, %v328_v28 }
  0xe2   : > { %394 = vst [vmem:[%s831_s6 + $0x78] sm:$0xff] %v328_v28  ;;  %v471_v25 = vmul.f32 %v349_v32, %v349_v32 }
  0xe3   : > { %v418_v35 = vadd.f32 %v417_v30, %v833_v49  ;;  %v487_v36 = vadd.f32 %v486_v29, %v456_v31  ;;  %401 = vst [vmem:[%s831_s6 + $0xb0] sm:$0xff] %v349_v32 }
  0xe4   : > { %409 = vst [vmem:[%s831_s6 + $0xf0] sm:$0xff] %v373_v47 }
  0xe5   : > { %v419_v38 = vadd.f32 %v418_v35, %v838_v51  ;;  %v488_v39 = vadd.f32 %v487_v36, %v457_v34  ;;  %v476_v36 = vmul.f32 %v891_v4, %v891_v4 }
  0xe7   : > { %v420_v41 = vadd.f32 %v419_v38, %v847_v54  ;;  %v489_v42 = vadd.f32 %v488_v39, %v458_v37  ;;  %v477_v38 = vmul.f32 %v902_v18, %v902_v18 }
  0xe9   : > { %v490_v44 = vadd.f32 %v489_v42, %v459_v40  ;;  %v421_v45 = vadd.f32 %v420_v41, %v860_v58  ;;  %v352_v46 = vpop.f32.mrf.mxu2  ;;  %v463_v58 = vmul.f32 %v325_v13, %v325_v13  ;;  %v376_v7 = vpop.f32.mrf.mxu3 }
  0xea   : > { %402 = vst [vmem:[%s831_s6 + $0xb8] sm:$0xff] %v352_v46  ;;  %v472_v26 = vmul.f32 %v352_v46, %v352_v46 }
  0xeb   : > { %v422_v49 = vadd.f32 %v421_v45, %v873_v62  ;;  %v491_v50 = vadd.f32 %v490_v44, %v460_v43  ;;  %410 = vst [vmem:[%s831_s6 + $0xf8] sm:$0xff] %v376_v7  ;;  %v479_v44 = vmul.f32 %v373_v47, %v373_v47  ;;  %v480_v45 = vmul.f32 %v376_v7, %v376_v7 }
  0xed   : > { %v423_v51 = vadd.f32 %v422_v49, %v886_v2  ;;  %v492_v54 = vadd.f32 %v491_v50, %v461_v48 }
  0xef   : > { %v493_v57 = vadd.f32 %v492_v54, %v462_v53  ;;  %v424_v61 = vadd.f32 %v423_v51, %v325_v13 }
  0xf1   : > { %v494_v5 = vadd.f32 %v493_v57, %v463_v58  ;;  %v425_v6 = vadd.f32 %v424_v61, %v328_v28 }
  0xf3   : > { %v426_v62 = vadd.f32 %v425_v6, %v841_v52  ;;  %v495_v9 = vadd.f32 %v494_v5, %v464_v1  ;;  %v469_v52 = vmul.f32 %v889_v3, %v889_v3 }
  0xf5   : > { %v427_v2 = vadd.f32 %v426_v62, %v850_v55  ;;  %v496_v11 = vadd.f32 %v495_v9, %v465_v8 }
  0xf7   : > { %v428_v13 = vadd.f32 %v427_v2, %v863_v59  ;;  %v497_v14 = vadd.f32 %v496_v11, %v466_v10 }
  0xf9   : > { %v498_v16 = vadd.f32 %v497_v14, %v467_v12  ;;  %v429_v19 = vadd.f32 %v428_v13, %v876_v63  ;;  %v473_v63 = vmul.f32 %v852_v56, %v852_v56 }
  0xfb   : > { %v430_v20 = vadd.f32 %v429_v19, %v889_v3  ;;  %v499_v21 = vadd.f32 %v498_v16, %v468_v15  ;;  %v474_v3 = vmul.f32 %v865_v60, %v865_v60 }
  0xfd   : > { %v431_v55 = vadd.f32 %v430_v20, %v900_v17  ;;  %v500_v23 = vadd.f32 %v499_v21, %v469_v52  ;;  %v475_v17 = vmul.f32 %v878_v0, %v878_v0 }
  0xff   : > { %v501_v59 = vadd.f32 %v500_v23, %v470_v22  ;;  %v432_v24 = vadd.f32 %v431_v55, %v349_v32 }
 0x101   : > { %v502_v27 = vadd.f32 %v501_v59, %v471_v25  ;;  %v433_v28 = vadd.f32 %v432_v24, %v352_v46 }
 0x103   : > { %v434_v29 = vadd.f32 %v433_v28, %v852_v56  ;;  %v503_v30 = vadd.f32 %v502_v27, %v472_v26 }
 0x105   : > { %v435_v31 = vadd.f32 %v434_v29, %v865_v60  ;;  %v504_v34 = vadd.f32 %v503_v30, %v473_v63 }
 0x107   : > { %v436_v32 = vadd.f32 %v435_v31, %v878_v0  ;;  %v505_v35 = vadd.f32 %v504_v34, %v474_v3  ;;  %v478_v0 = vmul.f32 %v910_v33, %v910_v33 }
 0x109   : > { %v506_v37 = vadd.f32 %v505_v35, %v475_v17  ;;  %v437_v56 = vadd.f32 %v436_v32, %v891_v4 }
 0x10b   : > { %v438_v39 = vadd.f32 %v437_v56, %v902_v18  ;;  %v507_v60 = vadd.f32 %v506_v37, %v476_v36 }
 0x10d   : > { %v439_v40 = vadd.f32 %v438_v39, %v910_v33  ;;  %v508_v41 = vadd.f32 %v507_v60, %v477_v38 }
 0x10f   : > { %v509_v42 = vadd.f32 %v508_v41, %v478_v0  ;;  %v440_v43 = vadd.f32 %v439_v40, %v373_v47 }
 0x111   : > { %v510_v46 = vadd.f32 %v509_v42, %v479_v44  ;;  %v441_v48 = vadd.f32 %v440_v43, %v376_v7 }
 0x113   : > { %v442_v4 = vrot.slane %v441_v48, 4  ;;  %v511_v49 = vadd.f32 %v510_v46, %v480_v45 }
 0x115   : > { %v443_v50 = vadd.f32 %v442_v4, %v441_v48  ;;  %v512_v51 = vrot.slane %v511_v49, 4 }
 0x117   : > { %v444_v18 = vrot.slane %v443_v50, 2  ;;  %v513_v53 = vadd.f32 %v512_v51, %v511_v49 }
 0x119   : > { %v445_v54 = vadd.f32 %v444_v18, %v443_v50  ;;  %v514_v57 = vrot.slane %v513_v53, 2 }
 0x11b   : > { %v446_v61 = vrot.slane %v445_v54, 1  ;;  %v515_v58 = vadd.f32 %v514_v57, %v513_v53 }
 0x11d   : > { %v447_v33 = vadd.f32 %v446_v61, %v445_v54  ;;  %v516_v47 = vrot.slane %v515_v58, 1 }
 0x11f   : > { %448 = vst [vmem:[%s214_s9] sm:$0x1] %v447_v33  ;;  %v517_v1 = vadd.f32 %v516_v47, %v515_v58 }
 0x121   : > { %518 = vst [vmem:[%s217_s12] sm:$0x1] %v517_v1 }
 0x122 PF: > { %s15_s15 = sadd.s32 1, %s698_s15  }
 0x123   : > { %p12_p5 = scmp.ge.s32.totalorder %s15_s15, 4  }
 0x125   :  { %14 = sbr.rel (!%p12_p5) target bundleno = 1 (0x1), region = 82 }

</bundles_post_ra>
